<compile_context>
chip_gen: v7x
topology: tpu7x:2x2x1
jax: 0.10.0
libtpu: 0.0.40
codegen_flags: <defaults>
</compile_context>

<pallas_src>
import functools

import jax
import jax.numpy as jnp
from jax.experimental import pallas as pl
from jax.experimental.pallas import tpu as pltpu

_LANES = 128
_ACC_ROWS = 8                    # accumulator = one f32 vreg: (8, 128)
_TARGET_TILE_BYTES = 1 << 20     # ~1 MiB per input tile (2 MiB double-buffered)
_MAX_BLOCK_ROWS = 4096           # hard cap on sublane rows per tile


def _elementwise_loss(x, mode, target_val, sign):
    """Per-element GAN loss transform (f32 math); shared by kernel & fallback."""
    x = x.astype(jnp.float32)
    if mode == "vanilla":
        # BCEWithLogitsLoss (stable form): max(x,0) - x*t + log(1 + exp(-|x|))
        t = jnp.float32(target_val)
        return jnp.maximum(x, 0.0) - x * t + jnp.log1p(jnp.exp(-jnp.abs(x)))
    if mode == "lsgan":
        d = x - jnp.float32(target_val)
        return d * d
    if mode == "mean":
        # wgan (+/- mean) and hinge generator (-mean): sign baked in here
        return jnp.float32(sign) * x
    if mode == "hinge_disc":
        # ReLU(1 + sign * x); sign = -1 for real, +1 for fake
        return jnp.maximum(1.0 + jnp.float32(sign) * x, 0.0)
    raise ValueError(f"unknown mode {mode}")


def _gan_sum_kernel(x_ref, acc_ref, *, mode, target_val, sign,
                    needs_mask, n_last_valid):
    """Elementwise loss + fold into a resident (8, 128) f32 accumulator."""
    c = pl.program_id(0)   # TensorCore split axis ("parallel")
    i = pl.program_id(1)   # reduction axis ("arbitrary")

    @pl.when(i == 0)
    def _():
        acc_ref[...] = jnp.zeros_like(acc_ref)

    val = _elementwise_loss(x_ref[...], mode, target_val, sign)
    rows, lanes = val.shape

    def _accumulate(v):
        # (block_rows, 128) -> (block_rows//8, 8, 128): layout-preserving
        # vreg-stack view; sum over the leading axis is pure VPU adds.
        acc_ref[...] += v.reshape(-1, _ACC_ROWS, _LANES).sum(axis=0)

    if needs_mask:
        is_last = jnp.logical_and(c == pl.num_programs(0) - 1,
                                  i == pl.num_programs(1) - 1)

        @pl.when(is_last)
        def _():
            # Block-local flat index (fits in int32) masks pad / OOB elements.
            r = jax.lax.broadcasted_iota(jnp.int32, (rows, lanes), 0)
            l = jax.lax.broadcasted_iota(jnp.int32, (rows, lanes), 1)
            local = r * lanes + l
            _accumulate(jnp.where(local < n_last_valid, val, 0.0))

        @pl.when(jnp.logical_not(is_last))
        def _():
            _accumulate(val)
    else:
        _accumulate(val)


def _reduced_mean(x, *, mode, target_val, sign, max_block_rows=_MAX_BLOCK_ROWS):
    """mean(elementwise_loss(x)) via a Pallas streaming reduction."""
    x_flat = x.reshape(-1)                       # free bitcast (contiguous)
    n = int(x_flat.shape[0])
    if n == 0:
        return jnp.float32(0.0)

    itemsize = jnp.dtype(x_flat.dtype).itemsize
    # sublane tiling multiple per dtype: f32 -> 8, bf16/f16 -> 16, int8/fp8 -> 32
    sub_mult = max(_ACC_ROWS, 32 // max(int(itemsize), 1))

    rows_p = pl.cdiv(n, _LANES)                  # rows after lane-width pad
    if rows_p < sub_mult:
        # Tiny input: not worth a kernel launch.
        return jnp.mean(_elementwise_loss(x_flat, mode, target_val, sign))

    rem = n % _LANES
    if rem:
        # Only non-multiple-of-128 sizes pay this copy; typical NCHW
        # discriminator outputs take the copy-free path (rem == 0).
        x_flat = jnp.pad(x_flat, (0, _LANES - rem))
    x2d = x_flat.reshape(rows_p, _LANES)         # native dtype, no f32 copy

    # Tile size: ~1 MiB of input per grid step (well inside scoped VMEM on
    # v5e/v6e/v7x with double-buffering), rounded to the dtype's sublane tile.
    max_rows = max(sub_mult,
                   (_TARGET_TILE_BYTES // (_LANES * itemsize)) // sub_mult * sub_mult)
    max_rows = min(max_rows, int(max_block_rows))
    max_rows = max(sub_mult, (max_rows // sub_mult) * sub_mult)
    block_rows = min(max_rows, (rows_p // sub_mult) * sub_mult)

    num_blocks = pl.cdiv(rows_p, block_rows)
    # Split across the two TensorCores (v7x) when the block count divides evenly.
    n_split = 2 if (num_blocks >= 2 and num_blocks % 2 == 0) else 1
    inner = num_blocks // n_split

    block_elems = block_rows * _LANES
    covered = num_blocks * block_elems
    needs_mask = covered != n
    n_last_valid = n - (num_blocks - 1) * block_elems   # valid elems in last block

    kernel = functools.partial(
        _gan_sum_kernel,
        mode=mode,
        target_val=float(target_val),
        sign=float(sign),
        needs_mask=bool(needs_mask),
        n_last_valid=int(n_last_valid),
    )

    partials = pl.pallas_call(
        kernel,
        out_shape=jax.ShapeDtypeStruct((n_split * _ACC_ROWS, _LANES), jnp.float32),
        grid=(n_split, inner),
        in_specs=[pl.BlockSpec((block_rows, _LANES),
                               lambda c, i, _inner=inner: (c * _inner + i, 0))],
        out_specs=pl.BlockSpec((_ACC_ROWS, _LANES), lambda c, i: (c, 0)),
        compiler_params=pltpu.CompilerParams(
            dimension_semantics=("parallel", "arbitrary")),
    )(x2d)

    return jnp.sum(partials) / jnp.float32(n)


class GANLoss:
    """JAX/Pallas port of the PyTorch GANLoss module (forward only)."""

    def __init__(self, gan_type, real_label_val=1.0, fake_label_val=0.0,
                 loss_weight=1.0):
        if gan_type not in ("vanilla", "lsgan", "wgan", "hinge"):
            raise NotImplementedError(f"GAN type {gan_type} is not implemented.")
        self.gan_type = gan_type
        self.real_label_val = real_label_val
        self.fake_label_val = fake_label_val
        self.loss_weight = loss_weight

    def __call__(self, input, target_is_real, is_disc=False):
        target_is_real = bool(target_is_real)
        is_disc = bool(is_disc)

        if self.gan_type == "vanilla":
            tv = self.real_label_val if target_is_real else self.fake_label_val
            loss = _reduced_mean(input, mode="vanilla", target_val=tv, sign=1.0)
        elif self.gan_type == "lsgan":
            tv = self.real_label_val if target_is_real else self.fake_label_val
            loss = _reduced_mean(input, mode="lsgan", target_val=tv, sign=1.0)
        elif self.gan_type == "wgan":
            sign = -1.0 if target_is_real else 1.0
            loss = _reduced_mean(input, mode="mean", target_val=0.0, sign=sign)
        else:  # hinge
            if is_disc:
                sign = -1.0 if target_is_real else 1.0
                loss = _reduced_mean(input, mode="hinge_disc",
                                     target_val=0.0, sign=sign)
            else:
                loss = _reduced_mean(input, mode="mean",
                                     target_val=0.0, sign=-1.0)

        return loss if is_disc else loss * jnp.float32(self.loss_weight)


def _reference_loss(gan_type, x, target_is_real, is_disc,
                    real_val=1.0, fake_val=0.0, loss_weight=1.0):
    """Pure-JAX reference matching the PyTorch semantics."""
    x = x.astype(jnp.float32)
    if gan_type == "vanilla":
        t = jnp.full_like(x, real_val if target_is_real else fake_val)
        loss = jnp.mean(jnp.maximum(x, 0) - x * t + jnp.log1p(jnp.exp(-jnp.abs(x))))
    elif gan_type == "lsgan":
        t = jnp.full_like(x, real_val if target_is_real else fake_val)
        loss = jnp.mean((x - t) ** 2)
    elif gan_type == "wgan":
        loss = -jnp.mean(x) if target_is_real else jnp.mean(x)
    else:  # hinge
        if is_disc:
            xi = -x if target_is_real else x
            loss = jnp.mean(jnp.maximum(1 + xi, 0))
        else:
            loss = -jnp.mean(x)
    return loss if is_disc else loss * loss_weight


if __name__ == "__main__":
    key = jax.random.PRNGKey(0)
    k1, k2 = jax.random.split(key)
    # discriminator predictions, NCHW
    x = jax.random.normal(k1, (2, 4, 16, 16), dtype=jnp.float32)      # exact tiling
    x_odd = jax.random.normal(k2, (2, 3, 17, 19), dtype=jnp.float32)  # masked tail path

    loss_weight = 0.5
    ok = True
    for gan_type in ("vanilla", "lsgan", "wgan", "hinge"):
        crit = GANLoss(gan_type, loss_weight=loss_weight)
        for inp, name in ((x, "x"), (x_odd, "x_odd")):
            for target_is_real in (True, False):
                for is_disc in (True, False):
                    got = jax.block_until_ready(crit(inp, target_is_real, is_disc))
                    want = _reference_loss(gan_type, inp, target_is_real, is_disc,
                                           loss_weight=loss_weight)
                    if not jnp.allclose(got, want, atol=1e-5, rtol=1e-5):
                        ok = False
                        print(f"MISMATCH {gan_type} {name} real={target_is_real} "
                              f"disc={is_disc}: {got} vs {want}")

    # multi-block + 2-way TensorCore-split path (grid (2, k)) on the small input
    got = jax.block_until_ready(
        _reduced_mean(x, mode="lsgan", target_val=1.0, sign=1.0, max_block_rows=8))
    want = jnp.mean((x - 1.0) ** 2)
    if not jnp.allclose(got, want, atol=1e-5, rtol=1e-5):
        ok = False
        print(f"MISMATCH split-path lsgan: {got} vs {want}")

    # native bf16 input (cast to f32 happens inside the kernel, halves DMA bytes)
    x_bf = x.astype(jnp.bfloat16)
    crit_bf = GANLoss("lsgan", loss_weight=1.0)
    got = jax.block_until_ready(crit_bf(x_bf, True, True))
    want = _reference_loss("lsgan", x_bf, True, True)
    if not jnp.allclose(got, want, atol=1e-5, rtol=1e-5):
        ok = False
        print(f"MISMATCH bf16 lsgan: {got} vs {want}")

    if ok:
        print("KERNEL_OK")
</pallas_src>

<mosaic_0001>
module attributes {stable_mosaic.version = 11 : i64} {
  func.func @_gan_sum_kernel(%arg0: i32, %arg1: i32, %arg2: memref<16x128xf32, #tpu.memory_space<vmem>>, %arg3: memref<8x128xf32, #tpu.memory_space<vmem>>) attributes {dimension_semantics = [#tpu.dimension_semantics<parallel>, #tpu.dimension_semantics<arbitrary>], iteration_bounds = array<i64: 1, 1>, scalar_prefetch = 0 : i64, scratch_operands = 0 : i64, tpu.core_type = #tpu.core_type<tc>, window_params = [{transform_indices = @transform_0, window_bounds = array<i64: 16, 128>}, {transform_indices = @transform_1, window_bounds = array<i64: 8, 128>}]} {
    %c0_i32 = arith.constant 0 : i32
    %0 = arith.cmpi eq, %arg1, %c0_i32 : i32
    %1 = arith.extui %0 : i1 to i32
    %c0_i32_0 = arith.constant 0 : i32
    %2 = arith.cmpi ne, %1, %c0_i32_0 : i32
    scf.if %2 {
      %cst_9 = arith.constant 0.000000e+00 : f32
      %20 = vector.broadcast %cst_9 : f32 to vector<8x128xf32>
      %c0_10 = arith.constant 0 : index
      %c0_11 = arith.constant 0 : index
      %21 = vector.load %arg3[%c0_10, %c0_11] : memref<8x128xf32, #tpu.memory_space<vmem>>, vector<8x128xf32>
      tpu.vector_store %arg3[%c0_10, %c0_11], %20 {strides = array<i32>} : memref<8x128xf32, #tpu.memory_space<vmem>>, vector<8x128xf32>,
    } else {
    }
    %c0 = arith.constant 0 : index
    %c0_1 = arith.constant 0 : index
    %3 = vector.load %arg2[%c0, %c0_1] : memref<16x128xf32, #tpu.memory_space<vmem>>, vector<16x128xf32>
    %cst = arith.constant 0.000000e+00 : f32
    %4 = vector.broadcast %cst : f32 to vector<16x128xf32>
    %5 = arith.maximumf %3, %4 : vector<16x128xf32>
    %cst_2 = arith.constant 1.000000e+00 : f32
    %6 = vector.broadcast %cst_2 : f32 to vector<16x128xf32>
    %7 = arith.mulf %3, %6 : vector<16x128xf32>
    %8 = arith.subf %5, %7 : vector<16x128xf32>
    %9 = math.absf %3 : vector<16x128xf32>
    %cst_3 = arith.constant 0.000000e+00 : f32
    %10 = vector.broadcast %cst_3 : f32 to vector<16x128xf32>
    %11 = arith.subf %10, %9 : vector<16x128xf32>
    %12 = math.exp %11 : vector<16x128xf32>
    %13 = math.log1p %12 : vector<16x128xf32>
    %14 = arith.addf %8, %13 : vector<16x128xf32>
    %c0_4 = arith.constant 0 : index
    %c0_5 = arith.constant 0 : index
    %15 = vector.load %arg3[%c0_4, %c0_5] : memref<8x128xf32, #tpu.memory_space<vmem>>, vector<8x128xf32>
    %16 = vector.shape_cast %14 : vector<16x128xf32> to vector<2x8x128xf32>
    %cst_6 = arith.constant dense<0.000000e+00> : vector<8x128xf32>
    %17 = vector.multi_reduction <add>, %16, %cst_6 [0] : vector<2x8x128xf32> to vector<8x128xf32>
    %18 = arith.addf %15, %17 : vector<8x128xf32>
    %c0_7 = arith.constant 0 : index
    %c0_8 = arith.constant 0 : index
    %19 = vector.load %arg3[%c0_7, %c0_8] : memref<8x128xf32, #tpu.memory_space<vmem>>, vector<8x128xf32>
    tpu.vector_store %arg3[%c0_7, %c0_8], %18 {strides = array<i32>} : memref<8x128xf32, #tpu.memory_space<vmem>>, vector<8x128xf32>,
    return
  }
  func.func @transform_0(%arg0: i32, %arg1: i32) -> (i32, i32) {
    %c1_i32 = arith.constant 1 : i32
    %0 = arith.muli %arg0, %c1_i32 : i32
    %1 = arith.addi %0, %arg1 : i32
    %c0_i32 = arith.constant 0 : i32
    %c0_i32_0 = arith.constant 0 : i32
    return %1, %c0_i32 : i32, i32
  }
  func.func @transform_1(%arg0: i32, %arg1: i32) -> (i32, i32) {
    %c0_i32 = arith.constant 0 : i32
    %c0_i32_0 = arith.constant 0 : i32
    return %arg0, %c0_i32 : i32, i32
  }
}

</mosaic_0001>

<bundles_post_ra>
// kernel: tpu_custom_call.1
= control target key start
LH: loop header
LB: loop body
LE: loop exit
PB: predicated region body
PF: predicated region fallthrough
CT: control target
= control target key end

     0   :  { %6 = vsyncpa [#allocation3], 0  ;;  %s186_s0 = inlined_call_operand.hbm [shape: f32[16,128], index: 0, kind: input, shape index: {}]   ;;  %s187_s1 = inlined_call_operand.hbm [shape: f32[8,128], index: 1, kind: output, shape index: {}]  }
   0x1   :  { %7 = vsyncpa [#allocation4], 0  ;;  %s148_s6 = smov [#allocation2]   ;;  %s100_s10 = scalar_lea.hbm %s186_s0, 256 }
   0x2   :  { %s17_s7 = sshll.u32 %s148_s6, 4  ;;  %p101_p0 = scmp.ne.s32.totalorder %s186_s0, %s100_s10  ;;  %s18_s7 = int_to_ptr.vmem [resolvable:$true] %s17_s7 }
   0x3   :  { %p104_p1 = scmp.lt.u32.totalorder %s100_s10, %s186_s0 }
   0x5   :  { %p106_p2 = pnand %p104_p1, %p101_p0 }
   0x7   :  { %109 = shalt.err (!%p106_p2)
}
   0x8   :  { %s110_s15 = scalar_lea.vmem %s18_s7, 256  ;;  %p115_p4 = scmp.lt.s32.totalorder %s18_s7, %s18_s7 }
   0x9   :  { %p111_p3 = scmp.ne.s32.totalorder %s18_s7, %s110_s15  ;;  %p116_p5 = scmp.lt.s32.totalorder %s110_s15, %s110_s15 }
   0xb   :  { %p117_p6 = por %p116_p5, %p115_p4 }
   0xd   :  { %p118_p7 = pnand %p117_p6, %p111_p3 }
   0xf   :  { %121 = shalt.err (!%p118_p7)
}
  0x10   :  { %s149_s16 = smov 128   ;;  %s150_s17 = smov 8  }
  0x11   :  { %23 = dma.hbm_to_vmem [thread:$0]  %s186_s0, 256, %s18_s7, [#allocation3], %s149_s16, %s149_s16, %s150_s17  }
  0x12   :  { %144 = dma.done.wait [#allocation3], 256  }
  0x13   :  { %145 = vsyncadd [#allocation3], 4294967040  ;;  %v34_v0 = vld [vmem:[#allocation2] sm:$0xff]  ;;  %v35_v1 = vld [vmem:[#allocation2 + $0x8] sm:$0xff]  ;;  %s151_s0 = smov [#allocation5]  }
  0x14   :  { %v40_v2 = vand.u32 2147483647, %v34_v0  ;;  %v41_v3 = vand.u32 2147483647, %v35_v1  ;;  %v36_v15 = vmax.f32 %v34_v0, 0.0  ;;  %v37_v18 = vmax.f32 %v35_v1, 0.0 }
  0x15   :  { %s78_s20 = sshll.u32 %s151_s0, 4  ;;  %s79_s20 = int_to_ptr.vmem [resolvable:$true] %s78_s20 }
  0x16   :  { %v42_v4 = vsub.f32 0.0, %v40_v2  ;;  %v43_v5 = vsub.f32 0.0, %v41_v3  ;;  %v38_v22 = vsub.f32 %v36_v15, %v34_v0  ;;  %v39_v25 = vsub.f32 %v37_v18, %v35_v1  ;;  %s122_s21 = scalar_lea.vmem %s79_s20, 128  ;;  %p127_p9 = scmp.lt.s32.totalorder %s79_s20, %s79_s20 }
  0x17   :  { %p123_p8 = scmp.ne.s32.totalorder %s79_s20, %s122_s21  ;;  %p128_p10 = scmp.lt.s32.totalorder %s122_s21, %s122_s21 }
  0x18   :  { %v44_v6 = vmul.f32 1.442695, %v42_v4  ;;  %v46_v7 = vmul.f32 1.442695, %v43_v5 }
  0x19   :  { %p129_p11 = por %p128_p10, %p127_p9 }
  0x1a   :  { %92 = vpow2.f32 %v44_v6 }
  0x1b   :  { %94 = vpow2.f32 %v46_v7  ;;  %p130_p12 = pnand %p129_p11, %p123_p8 }
  0x24   :  { %v93_v8 = vpop.eup %92 }
  0x25   :  { %v95_v9 = vpop.eup %94  ;;  %v48_v10 = vadd.f32 1.0, %v93_v8  ;;  %v51_v12 = vmul.f32 -0.5, %v93_v8  ;;  %v54_v16 = vand.u32 2147483647, %v93_v8 }
  0x26   :  { %v57_v11 = vadd.f32 1.0, %v95_v9  ;;  %v60_v13 = vmul.f32 -0.5, %v95_v9  ;;  %v63_v19 = vand.u32 2147483647, %v95_v9 }
  0x27   :  { %96 = vlog2.f32 %v48_v10  ;;  %v52_v14 = vadd.f32 1.0, %v51_v12  ;;  %vm55_vm0 = vcmp.lt.f32.partialorder %v54_v16, 0.0004427343 }
  0x28   :  { %98 = vlog2.f32 %v57_v11  ;;  %v61_v17 = vadd.f32 1.0, %v60_v13  ;;  %vm64_vm1 = vcmp.lt.f32.partialorder %v63_v19, 0.0004427343 }
  0x29   :  { %v53_v20 = vmul.f32 %v93_v8, %v52_v14 }
  0x2a   :  { %v62_v23 = vmul.f32 %v95_v9, %v61_v17 }
  0x31   :  { %v97_v21 = vpop.eup %96 }
  0x32   :  { %v99_v24 = vpop.eup %98  ;;  %v50_v26 = vmul.f32 0.6931472, %v97_v21 }
  0x33   :  { %v59_v27 = vmul.f32 0.6931472, %v99_v24 }
  0x34   :  { %v56_v28 = vsel %vm55_vm0, %v53_v20, %v50_v26 }
  0x35   :  { %v65_v29 = vsel %vm64_vm1, %v62_v23, %v59_v27  ;;  %v66_v30 = vadd.f32 %v56_v28, %v38_v22 }
  0x36   :  { %v67_v31 = vadd.f32 %v65_v29, %v39_v25 }
  0x38   :  { %v69_v32 = vadd.f32 %v67_v31, %v66_v30 }
  0x3a   :  { %71 = vst [vmem:[#allocation5] sm:$0xff] %v69_v32 }
  0x3b   :  { %133 = shalt.err (!%p130_p12)
}
  0x3c   :  { %s134_s24 = scalar_lea.hbm %s187_s1, 128 }
  0x3d   :  { %p135_p13 = scmp.ne.s32.totalorder %s187_s1, %s134_s24  ;;  %p138_p0 = scmp.lt.u32.totalorder %s134_s24, %s187_s1 }
  0x3f   :  { %p140_p1 = pnand %p138_p0, %p135_p13 }
  0x41   :  { %143 = shalt.err (!%p140_p1)
}
  0x42   :  { %81 = dma.vmem_to_hbm [thread:$0]  %s79_s20, 128, %s187_s1, [#allocation4]  }
  0x43   :  { %146 = dma.done.wait [#allocation4], 128  }
  0x44   :  { %147 = vsyncadd [#allocation4], 4294967168 }
  0x45   :  { %85 = vsyncpa [#allocation3], 1 }
  0x46   :  { %86 = vsyncpa [#allocation4], 1 }

</bundles_post_ra>
